<compile_context>
chip_gen: v7x
topology: tpu7x:2x2x1
jax: 0.10.0
libtpu: 0.0.40
codegen_flags: <defaults>
</compile_context>

<pallas_src>
import jax
import jax.numpy as jnp
from jax import lax
from jax.experimental import pallas as pl
from jax.experimental.pallas import tpu as pltpu

HIDDEN = 64  # fixed by the PyTorch module


def mlp_kernel(x_ref, w1_ref, b1_ref, w2_ref, b2_ref, w3_ref, b3_ref,
               w4t_ref, b4_ref, o_ref):
    # x_ref : (tile, num_obs) f32          (native layout, cast to bf16 here)
    # w1..w3: (out, in) bf16 ; b1..b3: (out, 1) f32  (broadcast over lanes)
    # w4t   : (HIDDEN, num_action) bf16 ; b4: (1, num_action) f32
    # o_ref : (tile, num_action) f32       (native layout, no wrapper transpose)
    x = x_ref[...].astype(jnp.bfloat16)

    # Layer 1: h^T = relu(W1 @ x^T + b1)  -> (HIDDEN, tile), batch lane-dense.
    h = lax.dot_general(w1_ref[...], x,
                        dimension_numbers=(((1,), (1,)), ((), ())),
                        preferred_element_type=jnp.float32)
    h = jnp.maximum(h + b1_ref[...], 0.0).astype(jnp.bfloat16)

    # Layers 2, 3: plain (out,in) @ (in,tile) matmuls, stay lane-dense.
    h = jnp.dot(w2_ref[...], h, preferred_element_type=jnp.float32)
    h = jnp.maximum(h + b2_ref[...], 0.0).astype(jnp.bfloat16)

    h = jnp.dot(w3_ref[...], h, preferred_element_type=jnp.float32)
    h = jnp.maximum(h + b3_ref[...], 0.0).astype(jnp.bfloat16)

    # Layer 4: out = relu(h^T @ W4^T + b4) -> (tile, num_action), written
    # directly in the consumer's layout (no XLA transpose pass afterwards).
    y = lax.dot_general(h, w4t_ref[...],
                        dimension_numbers=(((0,), (0,)), ((), ())),
                        preferred_element_type=jnp.float32)
    y = jnp.maximum(y + b4_ref[...], 0.0)

    o_ref[...] = (y * 20.0 - 10.0).astype(o_ref.dtype)


def _pick_batch_tile(B):
    """Tile heuristic from the perf review.

    - Whole batch in one grid step when B <= 512 (grid steps are a sequential
      loop on single-TC chips; ~0.35us/step overhead dwarfs this MLP's compute).
    - Otherwise the largest tile in {512, 256, 128} (capped at 512 so the
      (64, tile) f32 intermediates stay near the 64-vreg file), preferring an
      even step count so v7x megacore ('parallel' axis over 2 TCs) stays
      balanced.
    """
    if B <= 512:
        return B
    for cand in (512, 256, 128):
        if B % cand == 0 and (B // cand) % 2 == 0:
            return cand
    for cand in (512, 256, 128):
        if B % cand == 0:
            return cand
    return B  # indivisible batch: single full-batch step


def mlp_net(x, params, *, batch_tile=None):
    """Pallas forward of MLPNet.

    x      : (B, num_observer) float32
    params : (w1, b1, w2, b2, w3, b3, w4, b4), w_i in PyTorch layout
             (out_features, in_features), b_i of shape (out_features,).
    Returns (B, num_action) float32.
    """
    w1, b1, w2, b2, w3, b3, w4, b4 = params
    B, num_obs = x.shape
    num_action = w4.shape[0]

    if batch_tile is None:
        batch_tile = _pick_batch_tile(B)
    assert B % batch_tile == 0, "batch must be divisible by batch_tile"

    # Tiny, one-time wrapper-side prep of the constant weights/biases only
    # (x itself is passed untouched in native layout).
    to_bf16 = lambda w: w.astype(jnp.bfloat16)
    w1b, w2b, w3b = map(to_bf16, (w1, w2, w3))
    w4t = w4.T.astype(jnp.bfloat16)                         # (HIDDEN, num_action)
    col = lambda b: b.reshape(-1, 1).astype(jnp.float32)    # (out, 1)
    b1c, b2c, b3c = map(col, (b1, b2, b3))
    b4r = b4.reshape(1, -1).astype(jnp.float32)             # (1, num_action)

    # Constant index_map: weights/biases resident in VMEM across all steps.
    full = lambda arr: pl.BlockSpec(arr.shape, lambda i: (0,) * arr.ndim)

    flops = 2 * B * (num_obs * HIDDEN + 2 * HIDDEN * HIDDEN + HIDDEN * num_action)
    bytes_accessed = (
        int(x.size) * 4 + B * num_action * 4
        + sum(int(w.size) * 2 for w in (w1b, w2b, w3b, w4t))
        + sum(int(b.size) * 4 for b in (b1c, b2c, b3c, b4r))
    )

    out = pl.pallas_call(
        mlp_kernel,
        out_shape=jax.ShapeDtypeStruct((B, num_action), jnp.float32),
        grid_spec=pltpu.PrefetchScalarGridSpec(
            num_scalar_prefetch=0,
            grid=(B // batch_tile,),
            in_specs=[
                pl.BlockSpec((batch_tile, num_obs), lambda i: (i, 0)),  # x tile
                full(w1b), full(b1c),
                full(w2b), full(b2c),
                full(w3b), full(b3c),
                full(w4t), full(b4r),
            ],
            out_specs=pl.BlockSpec((batch_tile, num_action), lambda i: (i, 0)),
        ),
        compiler_params=pltpu.CompilerParams(
            dimension_semantics=("parallel",)),   # shards batch tiles across TCs on v7x
        cost_estimate=pl.CostEstimate(
            flops=flops, transcendentals=0, bytes_accessed=bytes_accessed),
    )(x.astype(jnp.float32), w1b, b1c, w2b, b2c, w3b, b3c, w4t, b4r)

    return out


def init_params(key, num_observer, num_action, hidden=HIDDEN):
    """Deterministic synthetic init (uniform, PyTorch-Linear-like bounds).

    Weights stored in PyTorch layout (out_features, in_features)."""
    dims = [(num_observer, hidden), (hidden, hidden), (hidden, hidden),
            (hidden, num_action)]
    params = []
    for d_in, d_out in dims:
        key, kw, kb = jax.random.split(key, 3)
        bound = 1.0 / jnp.sqrt(d_in)
        w = jax.random.uniform(kw, (d_out, d_in), jnp.float32, -bound, bound)
        b = jax.random.uniform(kb, (d_out,), jnp.float32, -bound, bound)
        params += [w, b]
    return tuple(params)


def mlp_net_ref(x, params):
    """Pure-JAX reference with the same bf16-at-MXU / f32-accumulate recipe.

    NOTE: bf16 matmul inputs are an intentional precision trade vs. a pure
    f32 PyTorch reference; after the *20 scale, absolute error vs. f32 can be
    up to ~1e-1, hence the loose tolerance in the test below is deliberate."""
    w1, b1, w2, b2, w3, b3, w4, b4 = params

    def layer(h, w, b):
        y = jnp.dot(h.astype(jnp.bfloat16), w.astype(jnp.bfloat16).T,
                    preferred_element_type=jnp.float32) + b
        return jnp.maximum(y, 0.0)

    h = layer(x, w1, b1)
    h = layer(h, w2, b2)
    h = layer(h, w3, b3)
    h = layer(h, w4, b4)
    return h * 20.0 - 10.0


if __name__ == "__main__":
    key = jax.random.PRNGKey(0)
    num_observer, num_action, batch = 16, 8, 256  # single full-batch grid step

    key, kx = jax.random.split(key)
    x = jax.random.normal(kx, (batch, num_observer), dtype=jnp.float32)
    params = init_params(key, num_observer, num_action)

    out = mlp_net(x, params)
    jax.block_until_ready(out)

    ref = mlp_net_ref(x, params)
    assert out.shape == (batch, num_action)
    assert jnp.allclose(out, ref, atol=1e-2, rtol=1e-2), (
        float(jnp.max(jnp.abs(out - ref))))
    print("KERNEL_OK")
</pallas_src>

<mosaic_0001>
module attributes {stable_mosaic.version = 11 : i64} {
  func.func @mlp_kernel(%arg0: i32, %arg1: memref<256x16xf32, #tpu.memory_space<vmem>>, %arg2: memref<64x16xbf16, #tpu.memory_space<vmem>>, %arg3: memref<64x1xf32, #tpu.memory_space<vmem>>, %arg4: memref<64x64xbf16, #tpu.memory_space<vmem>>, %arg5: memref<64x1xf32, #tpu.memory_space<vmem>>, %arg6: memref<64x64xbf16, #tpu.memory_space<vmem>>, %arg7: memref<64x1xf32, #tpu.memory_space<vmem>>, %arg8: memref<64x8xbf16, #tpu.memory_space<vmem>>, %arg9: memref<1x8xf32, #tpu.memory_space<vmem>>, %arg10: memref<256x8xf32, #tpu.memory_space<vmem>>) attributes {dimension_semantics = [#tpu.dimension_semantics<parallel>], iteration_bounds = array<i64: 1>, scalar_prefetch = 0 : i64, scratch_operands = 0 : i64, tpu.core_type = #tpu.core_type<tc>, window_params = [{transform_indices = @transform_0, window_bounds = array<i64: 256, 16>}, {pipeline_mode = #tpu.pipeline_mode<synchronous>, transform_indices = @transform_1, window_bounds = array<i64: 64, 16>}, {pipeline_mode = #tpu.pipeline_mode<synchronous>, transform_indices = @transform_2, window_bounds = array<i64: 64, 1>}, {pipeline_mode = #tpu.pipeline_mode<synchronous>, transform_indices = @transform_3, window_bounds = array<i64: 64, 64>}, {pipeline_mode = #tpu.pipeline_mode<synchronous>, transform_indices = @transform_4, window_bounds = array<i64: 64, 1>}, {pipeline_mode = #tpu.pipeline_mode<synchronous>, transform_indices = @transform_5, window_bounds = array<i64: 64, 64>}, {pipeline_mode = #tpu.pipeline_mode<synchronous>, transform_indices = @transform_6, window_bounds = array<i64: 64, 1>}, {pipeline_mode = #tpu.pipeline_mode<synchronous>, transform_indices = @transform_7, window_bounds = array<i64: 64, 8>}, {pipeline_mode = #tpu.pipeline_mode<synchronous>, transform_indices = @transform_8, window_bounds = array<i64: 1, 8>}, {transform_indices = @transform_9, window_bounds = array<i64: 256, 8>}]} {
    %c0 = arith.constant 0 : index
    %c0_0 = arith.constant 0 : index
    %0 = vector.load %arg1[%c0, %c0_0] : memref<256x16xf32, #tpu.memory_space<vmem>>, vector<256x16xf32>
    %1 = arith.truncf %0 : vector<256x16xf32> to vector<256x16xbf16>
    %c0_1 = arith.constant 0 : index
    %c0_2 = arith.constant 0 : index
    %2 = vector.load %arg2[%c0_1, %c0_2] : memref<64x16xbf16, #tpu.memory_space<vmem>>, vector<64x16xbf16>
    %cst = arith.constant dense<0.000000e+00> : vector<64x256xf32>
    %3 = tpu.matmul %2, %1, %cst {dimension_numbers = #tpu.dot_dimension_numbers<[1], [1], [0], [0], [0, 0, 1, 0], [], []>} : vector<64x16xbf16>, vector<256x16xbf16>, vector<64x256xf32> -> vector<64x256xf32>
    %c0_3 = arith.constant 0 : index
    %c0_4 = arith.constant 0 : index
    %4 = vector.load %arg3[%c0_3, %c0_4] : memref<64x1xf32, #tpu.memory_space<vmem>>, vector<64x1xf32>
    %5 = vector.broadcast %4 : vector<64x1xf32> to vector<64x256xf32>
    %6 = arith.addf %3, %5 : vector<64x256xf32>
    %cst_5 = arith.constant 0.000000e+00 : f32
    %7 = vector.broadcast %cst_5 : f32 to vector<64x256xf32>
    %8 = arith.maximumf %6, %7 : vector<64x256xf32>
    %9 = arith.truncf %8 : vector<64x256xf32> to vector<64x256xbf16>
    %c0_6 = arith.constant 0 : index
    %c0_7 = arith.constant 0 : index
    %10 = vector.load %arg4[%c0_6, %c0_7] : memref<64x64xbf16, #tpu.memory_space<vmem>>, vector<64x64xbf16>
    %cst_8 = arith.constant dense<0.000000e+00> : vector<64x256xf32>
    %11 = tpu.matmul %10, %9, %cst_8 {dimension_numbers = #tpu.dot_dimension_numbers<[1], [0], [0], [1], [0, 0, 1, 1], [], []>} : vector<64x64xbf16>, vector<64x256xbf16>, vector<64x256xf32> -> vector<64x256xf32>
    %c0_9 = arith.constant 0 : index
    %c0_10 = arith.constant 0 : index
    %12 = vector.load %arg5[%c0_9, %c0_10] : memref<64x1xf32, #tpu.memory_space<vmem>>, vector<64x1xf32>
    %13 = vector.broadcast %12 : vector<64x1xf32> to vector<64x256xf32>
    %14 = arith.addf %11, %13 : vector<64x256xf32>
    %cst_11 = arith.constant 0.000000e+00 : f32
    %15 = vector.broadcast %cst_11 : f32 to vector<64x256xf32>
    %16 = arith.maximumf %14, %15 : vector<64x256xf32>
    %17 = arith.truncf %16 : vector<64x256xf32> to vector<64x256xbf16>
    %c0_12 = arith.constant 0 : index
    %c0_13 = arith.constant 0 : index
    %18 = vector.load %arg6[%c0_12, %c0_13] : memref<64x64xbf16, #tpu.memory_space<vmem>>, vector<64x64xbf16>
    %cst_14 = arith.constant dense<0.000000e+00> : vector<64x256xf32>
    %19 = tpu.matmul %18, %17, %cst_14 {dimension_numbers = #tpu.dot_dimension_numbers<[1], [0], [0], [1], [0, 0, 1, 1], [], []>} : vector<64x64xbf16>, vector<64x256xbf16>, vector<64x256xf32> -> vector<64x256xf32>
    %c0_15 = arith.constant 0 : index
    %c0_16 = arith.constant 0 : index
    %20 = vector.load %arg7[%c0_15, %c0_16] : memref<64x1xf32, #tpu.memory_space<vmem>>, vector<64x1xf32>
    %21 = vector.broadcast %20 : vector<64x1xf32> to vector<64x256xf32>
    %22 = arith.addf %19, %21 : vector<64x256xf32>
    %cst_17 = arith.constant 0.000000e+00 : f32
    %23 = vector.broadcast %cst_17 : f32 to vector<64x256xf32>
    %24 = arith.maximumf %22, %23 : vector<64x256xf32>
    %25 = arith.truncf %24 : vector<64x256xf32> to vector<64x256xbf16>
    %c0_18 = arith.constant 0 : index
    %c0_19 = arith.constant 0 : index
    %26 = vector.load %arg8[%c0_18, %c0_19] : memref<64x8xbf16, #tpu.memory_space<vmem>>, vector<64x8xbf16>
    %cst_20 = arith.constant dense<0.000000e+00> : vector<256x8xf32>
    %27 = tpu.matmul %25, %26, %cst_20 {dimension_numbers = #tpu.dot_dimension_numbers<[0], [0], [1], [1], [0, 1, 1, 1], [], []>} : vector<64x256xbf16>, vector<64x8xbf16>, vector<256x8xf32> -> vector<256x8xf32>
    %c0_21 = arith.constant 0 : index
    %c0_22 = arith.constant 0 : index
    %28 = vector.load %arg9[%c0_21, %c0_22] : memref<1x8xf32, #tpu.memory_space<vmem>>, vector<1x8xf32>
    %29 = vector.broadcast %28 : vector<1x8xf32> to vector<256x8xf32>
    %30 = arith.addf %27, %29 : vector<256x8xf32>
    %cst_23 = arith.constant 0.000000e+00 : f32
    %31 = vector.broadcast %cst_23 : f32 to vector<256x8xf32>
    %32 = arith.maximumf %30, %31 : vector<256x8xf32>
    %cst_24 = arith.constant 2.000000e+01 : f32
    %33 = vector.broadcast %cst_24 : f32 to vector<256x8xf32>
    %34 = arith.mulf %32, %33 : vector<256x8xf32>
    %cst_25 = arith.constant 1.000000e+01 : f32
    %35 = vector.broadcast %cst_25 : f32 to vector<256x8xf32>
    %36 = arith.subf %34, %35 : vector<256x8xf32>
    %c0_26 = arith.constant 0 : index
    %c0_27 = arith.constant 0 : index
    %37 = vector.load %arg10[%c0_26, %c0_27] : memref<256x8xf32, #tpu.memory_space<vmem>>, vector<256x8xf32>
    tpu.vector_store %arg10[%c0_26, %c0_27], %36 {strides = array<i32>} : memref<256x8xf32, #tpu.memory_space<vmem>>, vector<256x8xf32>,
    return
  }
  func.func @transform_0(%arg0: i32) -> (i32, i32) {
    %c0_i32 = arith.constant 0 : i32
    %c0_i32_0 = arith.constant 0 : i32
    return %arg0, %c0_i32 : i32, i32
  }
  func.func @transform_1(%arg0: i32) -> (i32, i32) {
    %c0_i32 = arith.constant 0 : i32
    %c0_i32_0 = arith.constant 0 : i32
    %c0_i32_1 = arith.constant 0 : i32
    return %c0_i32, %c0_i32_0 : i32, i32
  }
  func.func @transform_2(%arg0: i32) -> (i32, i32) {
    %c0_i32 = arith.constant 0 : i32
    %c0_i32_0 = arith.constant 0 : i32
    %c0_i32_1 = arith.constant 0 : i32
    return %c0_i32, %c0_i32_0 : i32, i32
  }
  func.func @transform_3(%arg0: i32) -> (i32, i32) {
    %c0_i32 = arith.constant 0 : i32
    %c0_i32_0 = arith.constant 0 : i32
    %c0_i32_1 = arith.constant 0 : i32
    return %c0_i32, %c0_i32_0 : i32, i32
  }
  func.func @transform_4(%arg0: i32) -> (i32, i32) {
    %c0_i32 = arith.constant 0 : i32
    %c0_i32_0 = arith.constant 0 : i32
    %c0_i32_1 = arith.constant 0 : i32
    return %c0_i32, %c0_i32_0 : i32, i32
  }
  func.func @transform_5(%arg0: i32) -> (i32, i32) {
    %c0_i32 = arith.constant 0 : i32
    %c0_i32_0 = arith.constant 0 : i32
    %c0_i32_1 = arith.constant 0 : i32
    return %c0_i32, %c0_i32_0 : i32, i32
  }
  func.func @transform_6(%arg0: i32) -> (i32, i32) {
    %c0_i32 = arith.constant 0 : i32
    %c0_i32_0 = arith.constant 0 : i32
    %c0_i32_1 = arith.constant 0 : i32
    return %c0_i32, %c0_i32_0 : i32, i32
  }
  func.func @transform_7(%arg0: i32) -> (i32, i32) {
    %c0_i32 = arith.constant 0 : i32
    %c0_i32_0 = arith.constant 0 : i32
    %c0_i32_1 = arith.constant 0 : i32
    return %c0_i32, %c0_i32_0 : i32, i32
  }
  func.func @transform_8(%arg0: i32) -> (i32, i32) {
    %c0_i32 = arith.constant 0 : i32
    %c0_i32_0 = arith.constant 0 : i32
    %c0_i32_1 = arith.constant 0 : i32
    return %c0_i32, %c0_i32_0 : i32, i32
  }
  func.func @transform_9(%arg0: i32) -> (i32, i32) {
    %c0_i32 = arith.constant 0 : i32
    %c0_i32_0 = arith.constant 0 : i32
    return %arg0, %c0_i32 : i32, i32
  }
}

</mosaic_0001>

<bundles_post_ra>
// kernel: tpu_custom_call.1
= control target key start
LH: loop header
LB: loop body
LE: loop exit
PB: predicated region body
PF: predicated region fallthrough
CT: control target
= control target key end

     0   :  { %vm157_vm0 = vcmask 130048   ;;  %v1295_v3 = vmov 0   ;;  %vm391_vm1 = vcmask 523264   ;;  %vm1062_vm2 = vcmask 64512   ;;  %s1789_s0 = inlined_call_operand.vmem [shape: f32[256,16], index: 0, kind: input, shape index: {}]   ;;  %s1790_s1 = inlined_call_operand.vmem [shape: bf16[64,16], index: 1, kind: input, shape index: {}]   ;;  %s1791_s2 = inlined_call_operand.vmem [shape: f32[64,1], index: 2, kind: input, shape index: {}]   ;;  %s1792_s4 = inlined_call_operand.vmem [shape: f32[64,1], index: 4, kind: input, shape index: {}]   ;;  %s1793_s6 = inlined_call_operand.vmem [shape: f32[64,1], index: 6, kind: input, shape index: {}]   ;;  %s1794_s3 = inlined_call_operand.vmem [shape: bf16[64,64], index: 3, kind: input, shape index: {}]   ;;  %s1795_s5 = inlined_call_operand.vmem [shape: bf16[64,64], index: 5, kind: input, shape index: {}]   ;;  %s1796_s7 = inlined_call_operand.vmem [shape: bf16[64,8], index: 7, kind: input, shape index: {}]   ;;  %s1797_s8 = inlined_call_operand.vmem [shape: f32[1,8], index: 8, kind: input, shape index: {}]   ;;  %s1798_s9 = inlined_call_operand.vmem [shape: f32[256,8], index: 9, kind: output, shape index: {}]  }
   0x1   :  { %v49_v0 = vld [vmem:[%s1789_s0 + $0x80] sm:$0xff]  ;;  %v50_v1 = vld [vmem:[%s1789_s0 + $0x88] sm:$0xff]  ;;  %1277 = vset.pattern.permute.xlu0 %v1295_v3  ;;  %1278 = vset.pattern.permute.xlu1 %v1295_v3  ;;  %v51_v6 = vld [vmem:[%s1789_s0 + $0x90] sm:$0xff] }
   0x2   :  { %v33_v2 = vld [vmem:[%s1789_s0] sm:$0xff]  ;;  %v73_v4 = vpack.c.bf16 %v50_v1, %v49_v0  ;;  %v34_v5 = vld [vmem:[%s1789_s0 + $0x8] sm:$0xff]  ;;  %v52_v7 = vld [vmem:[%s1789_s0 + $0x98] sm:$0xff]  ;;  %436 = vmatprep.mubr.bf16.mxu1 %v1295_v3 }
   0x3   :  { %v65_v8 = vpack.c.bf16 %v34_v5, %v33_v2  ;;  %v74_v9 = vpack.c.bf16 %v52_v7, %v51_v6  ;;  %v35_v10 = vld [vmem:[%s1789_s0 + $0x10] sm:$0xff]  ;;  %v36_v11 = vld [vmem:[%s1789_s0 + $0x18] sm:$0xff]  ;;  %v53_v14 = vld [vmem:[%s1789_s0 + $0xa0] sm:$0xff] }
   0x4   :  { %1268 = vmatprep.subr.msk.bf16.mxu0 %vm157_vm0, %v73_v4  ;;  %v66_v13 = vpack.c.bf16 %v36_v11, %v35_v10  ;;  %v54_v15 = vld [vmem:[%s1789_s0 + $0xa8] sm:$0xff]  ;;  %v37_v18 = vld [vmem:[%s1789_s0 + $0x20] sm:$0xff]  ;;  %v55_v23 = vld [vmem:[%s1789_s0 + $0xb0] sm:$0xff] }
   0x5   :  { %v171_v12 = vsel %vm157_vm0, %v65_v8, 0  ;;  %v75_v17 = vpack.c.bf16 %v54_v15, %v53_v14  ;;  %v38_v19 = vld [vmem:[%s1789_s0 + $0x28] sm:$0xff]  ;;  %v1392_v20 = vld [vmem:[%s1790_s1] sm:$0xff]   ;;  %v56_v24 = vld [vmem:[%s1789_s0 + $0xb8] sm:$0xff] }
   0x6   :  { %1177 = vmatpush3.bf16.xpose.msra.mxu0 %v171_v12  ;;  %v174_v16 = vsel %vm157_vm0, %v66_v13, 0  ;;  %1192 = vmatprep.mubr.msk.bf16.mxu0 %vm157_vm0, %v1392_v20  ;;  %v67_v21 = vpack.c.bf16 %v38_v19, %v37_v18  ;;  %v89_v22 = vld [vmem:[%s1791_s2] sm:$0xff]  ;;  %v91_v25 = vld [vmem:[%s1791_s2 + $0x10] sm:$0xff]  ;;  %v90_v26 = vld [vmem:[%s1791_s2 + $0x8] sm:$0xff]  ;;  %v76_v29 = vpack.c.bf16 %v56_v24, %v55_v23 }
   0x7   :  { %1269 = vmatprep.subr.msk.bf16.mxu0 %vm157_vm0, %v74_v9  ;;  %99 = vperm.xlu0 %1277, %v89_v22   ;;  %v92_v27 = vld [vmem:[%s1791_s2 + $0x18] sm:$0xff]  ;;  %v39_v30 = vld [vmem:[%s1789_s0 + $0x30] sm:$0xff]  ;;  %v93_v32 = vld [vmem:[%s1791_s2 + $0x20] sm:$0xff] }
   0x8   :  { %109 = vperm.xlu1 %1278, %v91_v25   ;;  %v177_v28 = vsel %vm157_vm0, %v67_v21, 0  ;;  %v40_v31 = vld [vmem:[%s1789_s0 + $0x38] sm:$0xff]  ;;  %v94_v33 = vld [vmem:[%s1791_s2 + $0x28] sm:$0xff]  ;;  %v57_v35 = vld [vmem:[%s1789_s0 + $0xc0] sm:$0xff] }
   0x9   :  { %v68_v34 = vpack.c.bf16 %v40_v31, %v39_v30  ;;  %v58_v36 = vld [vmem:[%s1789_s0 + $0xc8] sm:$0xff]  ;;  %v95_v37 = vld [vmem:[%s1791_s2 + $0x30] sm:$0xff]  ;;  %v96_v38 = vld [vmem:[%s1791_s2 + $0x38] sm:$0xff] }
   0xa   :  { %v77_v40 = vpack.c.bf16 %v58_v36, %v57_v35  ;;  %v41_v41 = vld [vmem:[%s1789_s0 + $0x40] sm:$0xff]  ;;  %v42_v42 = vld [vmem:[%s1789_s0 + $0x48] sm:$0xff]  ;;  %v59_v46 = vld [vmem:[%s1789_s0 + $0xd0] sm:$0xff] }
   0xb   :  { %104 = vperm.xlu0 %1277, %v90_v26   ;;  %v180_v39 = vsel %vm157_vm0, %v68_v34, 0  ;;  %v323_v43 = vld [vmem:[%s1792_s4] sm:$0xff]  ;;  %v324_v44 = vld [vmem:[%s1792_s4 + $0x8] sm:$0xff]  ;;  %v69_v45 = vpack.c.bf16 %v42_v42, %v41_v41  ;;  %v60_v47 = vld [vmem:[%s1789_s0 + $0xd8] sm:$0xff] }
   0xc   :  { %114 = vperm.xlu1 %1278, %v92_v27   ;;  %v325_v48 = vld [vmem:[%s1792_s4 + $0x10] sm:$0xff]  ;;  %v326_v49 = vld [vmem:[%s1792_s4 + $0x18] sm:$0xff]  ;;  %v78_v51 = vpack.c.bf16 %v60_v47, %v59_v46  ;;  %v327_v54 = vld [vmem:[%s1792_s4 + $0x20] sm:$0xff] }
   0xd   :  { %v183_v50 = vsel %vm157_vm0, %v69_v45, 0  ;;  %v43_v52 = vld [vmem:[%s1789_s0 + $0x50] sm:$0xff]  ;;  %v44_v53 = vld [vmem:[%s1789_s0 + $0x58] sm:$0xff]  ;;  %v328_v55 = vld [vmem:[%s1792_s4 + $0x28] sm:$0xff] }
   0xe   :  { %1179 = vmatpush3.bf16.xpose.msra.mxu0 %v174_v16  ;;  %v70_v56 = vpack.c.bf16 %v44_v53, %v43_v52  ;;  %v61_v57 = vld [vmem:[%s1789_s0 + $0xe0] sm:$0xff]  ;;  %v62_v58 = vld [vmem:[%s1789_s0 + $0xe8] sm:$0xff]  ;;  %v329_v59 = vld [vmem:[%s1792_s4 + $0x30] sm:$0xff] }
   0xf   :  { %1270 = vmatprep.subr.msk.bf16.mxu0 %vm157_vm0, %v75_v17  ;;  %119 = vperm.xlu0 %1277, %v93_v32   ;;  %v330_v60 = vld [vmem:[%s1792_s4 + $0x38] sm:$0xff]  ;;  %v79_v62 = vpack.c.bf16 %v62_v58, %v61_v57  ;;  %v45_v63 = vld [vmem:[%s1789_s0 + $0x60] sm:$0xff]  ;;  %v46_v0 = vld [vmem:[%s1789_s0 + $0x68] sm:$0xff] }
  0x10   :  { %124 = vperm.xlu1 %1278, %v94_v33   ;;  %v186_v61 = vsel %vm157_vm0, %v70_v56, 0  ;;  %v509_v1 = vld [vmem:[%s1793_s6] sm:$0xff]  ;;  %v510_v2 = vld [vmem:[%s1793_s6 + $0x8] sm:$0xff]  ;;  %v71_v4 = vpack.c.bf16 %v46_v0, %v45_v63  ;;  %v63_v5 = vld [vmem:[%s1789_s0 + $0xf0] sm:$0xff] }
  0x11   :  { %v64_v6 = vld [vmem:[%s1789_s0 + $0xf8] sm:$0xff]  ;;  %v511_v7 = vld [vmem:[%s1793_s6 + $0x10] sm:$0xff]  ;;  %v513_v13 = vld [vmem:[%s1793_s6 + $0x20] sm:$0xff] }
  0x12   :  { %v512_v8 = vld [vmem:[%s1793_s6 + $0x18] sm:$0xff]  ;;  %v189_v9 = vsel %vm157_vm0, %v71_v4, 0  ;;  %v80_v10 = vpack.c.bf16 %v64_v6, %v63_v5  ;;  %v47_v11 = vld [vmem:[%s1789_s0 + $0x70] sm:$0xff]  ;;  %v514_v14 = vld [vmem:[%s1793_s6 + $0x28] sm:$0xff] }
  0x13   :  { %129 = vperm.xlu0 %1277, %v95_v37   ;;  %v48_v12 = vld [vmem:[%s1789_s0 + $0x78] sm:$0xff]  ;;  %v515_v16 = vld [vmem:[%s1793_s6 + $0x30] sm:$0xff]  ;;  %v1280_v19 = vld [vmem:[%s1790_s1 + $0x8] sm:$0xff]  }
  0x14   :  { %134 = vperm.xlu1 %1278, %v96_v38   ;;  %v72_v15 = vpack.c.bf16 %v48_v12, %v47_v11  ;;  %v516_v17 = vld [vmem:[%s1793_s6 + $0x38] sm:$0xff]  ;;  %v1281_v21 = vld [vmem:[%s1790_s1 + $0x10] sm:$0xff]  }
  0x15   :  { %v1282_v22 = vld [vmem:[%s1790_s1 + $0x18] sm:$0xff]  }
  0x16   :  { %1181 = vmatpush3.bf16.xpose.msra.mxu0 %v177_v28  ;;  %v192_v18 = vsel %vm157_vm0, %v72_v15, 0 }
  0x17   :  { %1271 = vmatprep.subr.msk.bf16.mxu0 %vm157_vm0, %v76_v29  ;;  %333 = vperm.xlu0 %1277, %v323_v43  }
  0x18   :  { %338 = vperm.xlu1 %1278, %v324_v44  }
  0x1b   :  { %343 = vperm.xlu0 %1277, %v325_v48  }
  0x1c   :  { %348 = vperm.xlu1 %1278, %v326_v49  }
  0x1e   :  { %1183 = vmatpush3.bf16.xpose.msra.mxu0 %v180_v39 }
  0x1f   :  { %1272 = vmatprep.subr.msk.bf16.mxu0 %vm157_vm0, %v77_v40  ;;  %353 = vperm.xlu0 %1277, %v327_v54  }
  0x20   :  { %358 = vperm.xlu1 %1278, %v328_v55  }
  0x23   :  { %363 = vperm.xlu0 %1277, %v329_v59  }
  0x24   :  { %368 = vperm.xlu1 %1278, %v330_v60  }
  0x26   :  { %1185 = vmatpush3.bf16.xpose.msra.mxu0 %v183_v50 }
  0x27   :  { %1273 = vmatprep.subr.msk.bf16.mxu0 %vm157_vm0, %v78_v51  ;;  %519 = vperm.xlu0 %1277, %v509_v1  }
  0x28   :  { %524 = vperm.xlu1 %1278, %v510_v2  }
  0x2b   :  { %529 = vperm.xlu0 %1277, %v511_v7  }
  0x2c   :  { %534 = vperm.xlu1 %1278, %v512_v8  }
  0x2e   :  { %1187 = vmatpush3.bf16.xpose.msra.mxu0 %v186_v61 }
  0x2f   :  { %1274 = vmatprep.subr.msk.bf16.mxu0 %vm157_vm0, %v79_v62  ;;  %539 = vperm.xlu0 %1277, %v513_v13  }
  0x30   :  { %544 = vperm.xlu1 %1278, %v514_v14  }
  0x33   :  { %549 = vperm.xlu0 %1277, %v515_v16  }
  0x34   :  { %554 = vperm.xlu1 %1278, %v516_v17  }
  0x36   :  { %1189 = vmatpush3.bf16.xpose.msra.mxu0 %v189_v9 }
  0x37   :  { %1275 = vmatprep.subr.msk.bf16.mxu0 %vm157_vm0, %v80_v10 }
  0x3e   :  { %1191 = vmatpush3.bf16.xpose.msra.mxu0 %v192_v18 }
  0x45   :  { %1193 = vmatmul.mubr.msk.bf16.vlgmr.msra.gmra.mrb[0].mxu0 %vm157_vm0, %v1392_v20 }
  0x46   :  { %1194 = vmatprep.mubr.msk.bf16.mxu0 %vm157_vm0, %v1280_v19 }
  0x4d   :  { %1195 = vmatmul.mubr.msk.bf16.gmra.mrb[4].mxu0 %vm157_vm0, %v1280_v19 }
  0x4e   :  { %1196 = vmatprep.mubr.msk.bf16.mxu0 %vm157_vm0, %v1281_v21 }
  0x55   :  { %1197 = vmatmul.mubr.msk.bf16.gmra.mrb[8].mxu0 %vm157_vm0, %v1281_v21 }
  0x56   :  { %1198 = vmatprep.mubr.msk.bf16.mxu0 %vm157_vm0, %v1282_v22 }
  0x5d   :  { %1199 = vmatmul.mubr.msk.bf16.gmra.mrb[12].mxu0 %vm157_vm0, %v1282_v22 }
  0x86   :  { %v100_v20 = vpop.permute.xlu0 %99 }
  0x87   :  { %v110_v31 = vpop.permute.xlu1 %109 }
  0x8a   :  { %v105_v26 = vpop.permute.xlu0 %104 }
  0x8b   :  { %v115_v42 = vpop.permute.xlu1 %114 }
  0x8e   :  { %v120_v53 = vpop.permute.xlu0 %119 }
  0x8f   :  { %v125_v58 = vpop.permute.xlu1 %124 }
  0x92   :  { %v130_v6 = vpop.permute.xlu0 %129 }
  0x93   :  { %v135_v11 = vpop.permute.xlu1 %134 }
 0x118   :  { %v252_v23 = vpop.f32.mrb[0].mxu0 }
 0x119   :  { %v253_v24 = vadd.f32 %v252_v23, %v100_v20  ;;  %v254_v25 = vpop.f32.mrb[1].mxu0  ;;  %v1283_v23 = vld [vmem:[%s1794_s3] sm:$0xff]  }
 0x11a   :  { %v255_v27 = vadd.f32 %v254_v25, %v100_v20  ;;  %v256_v28 = vpop.f32.mrb[2].mxu0  ;;  %v1285_v25 = vld [vmem:[%s1794_s3 + $0x10] sm:$0xff]  }
 0x11b   :  { %v257_v29 = vadd.f32 %v256_v28, %v105_v26  ;;  %v258_v30 = vpop.f32.mrb[3].mxu0  ;;  %v291_v33 = vmax.f32 %v253_v24, 0.0  ;;  %v1284_v24 = vld [vmem:[%s1794_s3 + $0x8] sm:$0xff]  }
 0x11c   :  { %v259_v32 = vadd.f32 %v258_v30, %v105_v26  ;;  %v292_v35 = vmax.f32 %v255_v27, 0.0  ;;  %v1286_v26 = vld [vmem:[%s1794_s3 + $0x18] sm:$0xff]   ;;  %v334_v27 = vpop.permute.xlu0 %333 }
 0x11d   :  { %v293_v34 = vmax.f32 %v257_v29, 0.0 }
 0x11e   :  { %v294_v36 = vmax.f32 %v259_v32, 0.0 }
 0x11f   :  { %v307_v37 = vpack.c.bf16 %v293_v34, %v291_v33 }
 0x120   :  { %v262_v38 = vpop.f32.mrb[4].mxu0  ;;  %v308_v39 = vpack.c.bf16 %v294_v36, %v292_v35 }
 0x121   :  { %v263_v40 = vadd.f32 %v262_v38, %v110_v31  ;;  %v264_v41 = vpop.f32.mrb[5].mxu0 }
 0x122   :  { %v265_v43 = vadd.f32 %v264_v41, %v110_v31  ;;  %v266_v44 = vpop.f32.mrb[6].mxu0  ;;  %404 = vmatprep.subr.bf16.mxu1 %v308_v39  ;;  %v339_v31 = vpop.permute.xlu1 %338 }
 0x123   :  { %v267_v45 = vadd.f32 %v266_v44, %v115_v42  ;;  %v268_v46 = vpop.f32.mrb[7].mxu0  ;;  %405 = vmatpush1.bf16.msra.mxu1 %v307_v37  ;;  %v295_v48 = vmax.f32 %v263_v40, 0.0 }
 0x124   :  { %v269_v47 = vadd.f32 %v268_v46, %v115_v42  ;;  %v296_v50 = vmax.f32 %v265_v43, 0.0  ;;  %v344_v42 = vpop.permute.xlu0 %343 }
 0x125   :  { %v297_v49 = vmax.f32 %v267_v45, 0.0 }
 0x126   :  { %v298_v51 = vmax.f32 %v269_v47, 0.0  ;;  %v349_v47 = vpop.permute.xlu1 %348 }
 0x127   :  { %v309_v52 = vpack.c.bf16 %v297_v49, %v295_v48 }
 0x128   :  { %v310_v54 = vpack.c.bf16 %v298_v51, %v296_v50  ;;  %v272_v55 = vpop.f32.mrb[8].mxu0 }
 0x129   :  { %v273_v56 = vadd.f32 %v272_v55, %v120_v53  ;;  %v274_v57 = vpop.f32.mrb[9].mxu0 }
 0x12a   :  { %v275_v59 = vadd.f32 %v274_v57, %v120_v53  ;;  %v276_v60 = vpop.f32.mrb[10].mxu0  ;;  %406 = vmatprep.subr.bf16.mxu1 %v310_v54 }
 0x12b   :  { %v277_v61 = vadd.f32 %v276_v60, %v125_v58  ;;  %v278_v62 = vpop.f32.mrb[11].mxu0  ;;  %407 = vmatpush1.bf16.msra.mxu1 %v309_v52  ;;  %v299_v0 = vmax.f32 %v273_v56, 0.0 }
 0x12c   :  { %v279_v63 = vadd.f32 %v278_v62, %v125_v58  ;;  %v300_v2 = vmax.f32 %v275_v59, 0.0  ;;  %v354_v58 = vpop.permute.xlu0 %353 }
 0x12d   :  { %v301_v1 = vmax.f32 %v277_v61, 0.0 }
 0x12e   :  { %v302_v4 = vmax.f32 %v279_v63, 0.0  ;;  %v359_v63 = vpop.permute.xlu1 %358 }
 0x12f   :  { %v311_v5 = vpack.c.bf16 %v301_v1, %v299_v0 }
 0x130   :  { %v312_v7 = vpack.c.bf16 %v302_v4, %v300_v2  ;;  %v282_v8 = vpop.f32.mrb[12].mxu0 }
 0x131   :  { %v283_v9 = vadd.f32 %v282_v8, %v130_v6  ;;  %v284_v10 = vpop.f32.mrb[13].mxu0 }
 0x132   :  { %v285_v12 = vadd.f32 %v284_v10, %v130_v6  ;;  %v286_v13 = vpop.f32.mrb[14].mxu0  ;;  %408 = vmatprep.subr.bf16.mxu1 %v312_v7 }
 0x133   :  { %v287_v14 = vadd.f32 %v286_v13, %v135_v11  ;;  %v288_v15 = vpop.f32.mrb[15].mxu0  ;;  %409 = vmatpush1.bf16.msra.mxu1 %v311_v5  ;;  %v303_v17 = vmax.f32 %v283_v9, 0.0 }
 0x134   :  { %v289_v16 = vadd.f32 %v288_v15, %v135_v11  ;;  %v304_v19 = vmax.f32 %v285_v12, 0.0  ;;  %v364_v11 = vpop.permute.xlu0 %363 }
 0x135   :  { %v305_v18 = vmax.f32 %v287_v14, 0.0 }
 0x136   :  { %v306_v21 = vmax.f32 %v289_v16, 0.0  ;;  %v369_v16 = vpop.permute.xlu1 %368 }
 0x137   :  { %v313_v22 = vpack.c.bf16 %v305_v18, %v303_v17 }
 0x138   :  { %v314_v20 = vpack.c.bf16 %v306_v21, %v304_v19 }
 0x13a   :  { %410 = vmatprep.subr.bf16.mxu1 %v314_v20 }
 0x13b   :  { %411 = vmatpush1.bf16.msra.mxu1 %v313_v22 }
 0x13e   :  { %1111 = vmatmul.mubr.msk.bf16.vlgmr.msra.gmra.mrb[0].mxu1 %vm391_vm1, %v1283_v23 }
 0x13f   :  { %446 = vmatprep.mubr.bf16.mxu1 %v1295_v3 }
 0x146   :  { %1112 = vmatmul.mubr.msk.bf16.gmra.mrb[4].mxu1 %vm391_vm1, %v1284_v24 }
 0x147   :  { %456 = vmatprep.mubr.bf16.mxu1 %v1295_v3 }
 0x14e   :  { %1113 = vmatmul.mubr.msk.bf16.gmra.mrb[8].mxu1 %vm391_vm1, %v1285_v25 }
 0x14f   :  { %466 = vmatprep.mubr.bf16.mxu1 %v1295_v3 }
 0x156   :  { %1114 = vmatmul.mubr.msk.bf16.gmra.mrb[12].mxu1 %vm391_vm1, %v1286_v26 }
 0x157   :  { %621 = vmatprep.mubr.bf16.mxu1 %v1295_v3 }
 0x211   :  { %v438_v28 = vpop.f32.mrb[0].mxu1 }
 0x212   :  { %v439_v29 = vadd.f32 %v438_v28, %v334_v27  ;;  %v440_v30 = vpop.f32.mrb[1].mxu1  ;;  %v1287_v28 = vld [vmem:[%s1795_s5] sm:$0xff]  }
 0x213   :  { %v441_v32 = vadd.f32 %v440_v30, %v334_v27  ;;  %v442_v33 = vpop.f32.mrb[2].mxu1  ;;  %v1289_v30 = vld [vmem:[%s1795_s5 + $0x10] sm:$0xff]  }
 0x214   :  { %v443_v34 = vadd.f32 %v442_v33, %v339_v31  ;;  %v444_v35 = vpop.f32.mrb[3].mxu1  ;;  %v477_v37 = vmax.f32 %v439_v29, 0.0  ;;  %v1288_v29 = vld [vmem:[%s1795_s5 + $0x8] sm:$0xff]  }
 0x215   :  { %v445_v36 = vadd.f32 %v444_v35, %v339_v31  ;;  %v478_v39 = vmax.f32 %v441_v32, 0.0  ;;  %v1290_v31 = vld [vmem:[%s1795_s5 + $0x18] sm:$0xff]   ;;  %v1291_v32 = vld [vmem:[%s1796_s7] sm:$0xff]   ;;  %v1292_v33 = vld [vmem:[%s1796_s7 + $0x8] sm:$0xff]   ;;  %v520_v35 = vpop.permute.xlu0 %519 }
 0x216   :  { %v479_v38 = vmax.f32 %v443_v34, 0.0  ;;  %1220 = vmatprep.subr.bf16.mxu0 %v1291_v32  ;;  %v1294_v34 = vld [vmem:[%s1796_s7 + $0x18] sm:$0xff]  }
 0x217   :  { %v480_v40 = vmax.f32 %v445_v36, 0.0  ;;  %1221 = vmatpush3.bf16.msra.mxu0 %v1291_v32 }
 0x218   :  { %v493_v41 = vpack.c.bf16 %v479_v38, %v477_v37  ;;  %1222 = vmatprep.subr.bf16.mxu0 %v1292_v33 }
 0x219   :  { %v494_v43 = vpack.c.bf16 %v480_v40, %v478_v39  ;;  %v448_v44 = vpop.f32.mrb[4].mxu1  ;;  %v525_v39 = vpop.permute.xlu1 %524 }
 0x21a   :  { %v449_v45 = vadd.f32 %v448_v44, %v344_v42  ;;  %v450_v46 = vpop.f32.mrb[5].mxu1 }
 0x21b   :  { %v451_v48 = vadd.f32 %v450_v46, %v344_v42  ;;  %v452_v49 = vpop.f32.mrb[6].mxu1  ;;  %589 = vmatprep.subr.bf16.mxu1 %v494_v43  ;;  %1223 = vmatpush3.bf16.msra.mxu0 %v1292_v33 }
 0x21c   :  { %v453_v50 = vadd.f32 %v452_v49, %v349_v47  ;;  %v454_v51 = vpop.f32.mrb[7].mxu1  ;;  %590 = vmatpush1.bf16.msra.mxu1 %v493_v41  ;;  %v481_v53 = vmax.f32 %v449_v45, 0.0 }
 0x21d   :  { %v455_v52 = vadd.f32 %v454_v51, %v349_v47  ;;  %v482_v55 = vmax.f32 %v451_v48, 0.0 }
 0x21e   :  { %v483_v54 = vmax.f32 %v453_v50, 0.0  ;;  %v530_v50 = vpop.permute.xlu0 %529 }
 0x21f   :  { %v484_v56 = vmax.f32 %v455_v52, 0.0 }
 0x220   :  { %v495_v57 = vpack.c.bf16 %v483_v54, %v481_v53 }
 0x221   :  { %v496_v59 = vpack.c.bf16 %v484_v56, %v482_v55  ;;  %v458_v60 = vpop.f32.mrb[8].mxu1  ;;  %v535_v55 = vpop.permute.xlu1 %534 }
 0x222   :  { %v459_v61 = vadd.f32 %v458_v60, %v354_v58  ;;  %v460_v62 = vpop.f32.mrb[9].mxu1 }
 0x223   :  { %v461_v0 = vadd.f32 %v460_v62, %v354_v58  ;;  %v462_v1 = vpop.f32.mrb[10].mxu1  ;;  %591 = vmatprep.subr.bf16.mxu1 %v496_v59 }
 0x224   :  { %v463_v2 = vadd.f32 %v462_v1, %v359_v63  ;;  %v464_v4 = vpop.f32.mrb[11].mxu1  ;;  %592 = vmatpush1.bf16.msra.mxu1 %v495_v57  ;;  %v485_v6 = vmax.f32 %v459_v61, 0.0 }
 0x225   :  { %v465_v5 = vadd.f32 %v464_v4, %v359_v63  ;;  %v486_v8 = vmax.f32 %v461_v0, 0.0 }
 0x226   :  { %v487_v7 = vmax.f32 %v463_v2, 0.0  ;;  %v540_v2 = vpop.permute.xlu0 %539 }
 0x227   :  { %v488_v9 = vmax.f32 %v465_v5, 0.0 }
 0x228   :  { %v497_v10 = vpack.c.bf16 %v487_v7, %v485_v6 }
 0x229   :  { %v498_v12 = vpack.c.bf16 %v488_v9, %v486_v8  ;;  %v468_v13 = vpop.f32.mrb[12].mxu1  ;;  %v545_v8 = vpop.permute.xlu1 %544 }
 0x22a   :  { %v469_v14 = vadd.f32 %v468_v13, %v364_v11  ;;  %v470_v15 = vpop.f32.mrb[13].mxu1 }
 0x22b   :  { %v471_v17 = vadd.f32 %v470_v15, %v364_v11  ;;  %v472_v18 = vpop.f32.mrb[14].mxu1  ;;  %593 = vmatprep.subr.bf16.mxu1 %v498_v12 }
 0x22c   :  { %v473_v19 = vadd.f32 %v472_v18, %v369_v16  ;;  %v474_v21 = vpop.f32.mrb[15].mxu1  ;;  %594 = vmatpush1.bf16.msra.mxu1 %v497_v10  ;;  %v489_v20 = vmax.f32 %v469_v14, 0.0 }
 0x22d   :  { %v475_v22 = vadd.f32 %v474_v21, %v369_v16  ;;  %v490_v24 = vmax.f32 %v471_v17, 0.0 }
 0x22e   :  { %v491_v23 = vmax.f32 %v473_v19, 0.0  ;;  %v550_v19 = vpop.permute.xlu0 %549 }
 0x22f   :  { %v492_v25 = vmax.f32 %v475_v22, 0.0 }
 0x230   :  { %v499_v26 = vpack.c.bf16 %v491_v23, %v489_v20 }
 0x231   :  { %v500_v27 = vpack.c.bf16 %v492_v25, %v490_v24  ;;  %v555_v24 = vpop.permute.xlu1 %554 }
 0x233   :  { %595 = vmatprep.subr.bf16.mxu1 %v500_v27 }
 0x234   :  { %596 = vmatpush1.bf16.msra.mxu1 %v499_v26 }
 0x235   :  { %1260 = vmatprep.subr.bf16.mxu1 %v1291_v32 }
 0x237   :  { %1119 = vmatmul.mubr.msk.bf16.vlgmr.msra.gmra.mrb[16].mxu1 %vm391_vm1, %v1287_v28 }
 0x238   :  { %631 = vmatprep.mubr.bf16.mxu1 %v1295_v3  ;;  %1264 = vmatpush3.bf16.msra.mxu1 %v1291_v32 }
 0x239   :  { %1261 = vmatprep.subr.bf16.mxu1 %v1292_v33 }
 0x23c   :  { %1265 = vmatpush3.bf16.msra.mxu1 %v1292_v33 }
 0x23f   :  { %1120 = vmatmul.mubr.msk.bf16.gmra.mrb[20].mxu1 %vm391_vm1, %v1288_v29 }
 0x240   :  { %641 = vmatprep.mubr.bf16.mxu1 %v1295_v3 }
 0x247   :  { %1121 = vmatmul.mubr.msk.bf16.gmra.mrb[24].mxu1 %vm391_vm1, %v1289_v30 }
 0x248   :  { %651 = vmatprep.mubr.bf16.mxu1 %v1295_v3  ;;  %v1293_v3 = vld [vmem:[%s1796_s7 + $0x10] sm:$0xff]  }
 0x249   :  { %1224 = vmatprep.subr.bf16.mxu0 %v1293_v3  ;;  %1262 = vmatprep.subr.bf16.mxu1 %v1293_v3 }
 0x24a   :  { %1225 = vmatpush3.bf16.msra.mxu0 %v1293_v3  ;;  %1266 = vmatpush3.bf16.msra.mxu1 %v1293_v3 }
 0x24b   :  { %1226 = vmatprep.subr.bf16.mxu0 %v1294_v34  ;;  %1263 = vmatprep.subr.bf16.mxu1 %v1294_v34 }
 0x24e   :  { %1227 = vmatpush3.bf16.msra.mxu0 %v1294_v34  ;;  %1267 = vmatpush3.bf16.msra.mxu1 %v1294_v34 }
 0x24f   :  { %1122 = vmatmul.mubr.msk.bf16.gmra.mrb[28].mxu1 %vm391_vm1, %v1290_v31 }
 0x30a   :  { %v623_v36 = vpop.f32.mrb[16].mxu1 }
 0x30b   :  { %v624_v37 = vadd.f32 %v623_v36, %v520_v35  ;;  %v625_v38 = vpop.f32.mrb[17].mxu1 }
 0x30c   :  { %v626_v40 = vadd.f32 %v625_v38, %v520_v35  ;;  %v627_v41 = vpop.f32.mrb[18].mxu1 }
 0x30d   :  { %v628_v42 = vadd.f32 %v627_v41, %v525_v39  ;;  %v629_v43 = vpop.f32.mrb[19].mxu1  ;;  %v662_v45 = vmax.f32 %v624_v37, 0.0 }
 0x30e   :  { %v630_v44 = vadd.f32 %v629_v43, %v525_v39  ;;  %v663_v47 = vmax.f32 %v626_v40, 0.0 }
 0x30f   :  { %v664_v46 = vmax.f32 %v628_v42, 0.0 }
 0x310   :  { %v665_v48 = vmax.f32 %v630_v44, 0.0 }
 0x311   :  { %v678_v49 = vpack.c.bf16 %v664_v46, %v662_v45 }
 0x312   :  { %v679_v51 = vpack.c.bf16 %v665_v48, %v663_v47  ;;  %v633_v52 = vpop.f32.mrb[20].mxu1 }
 0x313   :  { %v634_v53 = vadd.f32 %v633_v52, %v530_v50  ;;  %v635_v54 = vpop.f32.mrb[21].mxu1  ;;  %701 = vxpose.xlu0.c.b16.start [1/4] (short) %v678_v49, 128 }
 0x314   :  { %v636_v56 = vadd.f32 %v635_v54, %v530_v50  ;;  %v637_v57 = vpop.f32.mrb[22].mxu1  ;;  %717 = vxpose.xlu1.c.b16.start [1/4] (short) %v679_v51, 128  ;;  %v1627_v51 = vld [vmem:[%s1797_s8] ss:$0 sm:$0xff] }
 0x315   :  { %v638_v58 = vadd.f32 %v637_v57, %v535_v55  ;;  %v639_v59 = vpop.f32.mrb[23].mxu1  ;;  %v666_v61 = vmax.f32 %v634_v53, 0.0 }
 0x316   :  { %v640_v60 = vadd.f32 %v639_v59, %v535_v55  ;;  %v667_v63 = vmax.f32 %v636_v56, 0.0 }
 0x317   :  { %v668_v62 = vmax.f32 %v638_v58, 0.0 }
 0x318   :  { %v669_v0 = vmax.f32 %v640_v60, 0.0 }
 0x319   :  { %v680_v1 = vpack.c.bf16 %v668_v62, %v666_v61 }
 0x31a   :  { %v681_v4 = vpack.c.bf16 %v669_v0, %v667_v63  ;;  %v643_v5 = vpop.f32.mrb[24].mxu1 }
 0x31b   :  { %v644_v6 = vadd.f32 %v643_v5, %v540_v2  ;;  %v645_v7 = vpop.f32.mrb[25].mxu1  ;;  %702 = vxpose.xlu0.c.b16.cont [2/4] (short) %v680_v1, 128 }
 0x31c   :  { %v646_v9 = vadd.f32 %v645_v7, %v540_v2  ;;  %v647_v10 = vpop.f32.mrb[26].mxu1  ;;  %718 = vxpose.xlu1.c.b16.cont [2/4] (short) %v681_v4, 128 }
 0x31d   :  { %v648_v11 = vadd.f32 %v647_v10, %v545_v8  ;;  %v649_v12 = vpop.f32.mrb[27].mxu1  ;;  %v670_v14 = vmax.f32 %v644_v6, 0.0 }
 0x31e   :  { %v650_v13 = vadd.f32 %v649_v12, %v545_v8  ;;  %v671_v16 = vmax.f32 %v646_v9, 0.0 }
 0x31f   :  { %v672_v15 = vmax.f32 %v648_v11, 0.0 }
 0x320   :  { %v673_v17 = vmax.f32 %v650_v13, 0.0 }
 0x321   :  { %v682_v18 = vpack.c.bf16 %v672_v15, %v670_v14 }
 0x322   :  { %v683_v21 = vpack.c.bf16 %v673_v17, %v671_v16  ;;  %v653_v22 = vpop.f32.mrb[28].mxu1 }
 0x323   :  { %v654_v20 = vadd.f32 %v653_v22, %v550_v19  ;;  %v655_v23 = vpop.f32.mrb[29].mxu1  ;;  %703 = vxpose.xlu0.c.b16.cont [3/4] (short) %v682_v18, 128 }
 0x324   :  { %v656_v25 = vadd.f32 %v655_v23, %v550_v19  ;;  %v657_v26 = vpop.f32.mrb[30].mxu1  ;;  %719 = vxpose.xlu1.c.b16.cont [3/4] (short) %v683_v21, 128 }
 0x325   :  { %v658_v27 = vadd.f32 %v657_v26, %v555_v24  ;;  %v659_v28 = vpop.f32.mrb[31].mxu1  ;;  %v674_v30 = vmax.f32 %v654_v20, 0.0 }
 0x326   :  { %v660_v29 = vadd.f32 %v659_v28, %v555_v24  ;;  %v675_v32 = vmax.f32 %v656_v25, 0.0 }
 0x327   :  { %v676_v31 = vmax.f32 %v658_v27, 0.0 }
 0x328   :  { %v677_v33 = vmax.f32 %v660_v29, 0.0 }
 0x329   :  { %v684_v3 = vpack.c.bf16 %v676_v31, %v674_v30 }
 0x32a   :  { %v685_v34 = vpack.c.bf16 %v677_v33, %v675_v32 }
 0x32b   :  { %704 = vxpose.xlu0.c.b16.end [4/4] (short) %v684_v3, 128 }
 0x32c   :  { %720 = vxpose.xlu1.c.b16.end [4/4] (short) %v685_v34, 128 }
 0x385   :  { %v709_v35 = vpop.trf.xlu0 }
 0x386   :  { %1228 = vmatprep.mubr.msk.bf16.mxu0 %vm391_vm1, %v709_v35  ;;  %v725_v39 = vpop.trf.xlu1 }
 0x389   :  { %v710_v36 = vpop.trf.xlu0 }
 0x38a   :  { %1229 = vmatmul.mubr.msk.bf16.vlgmr.msra.gmra.mrb[16].mxu0 %vm391_vm1, %v710_v36  ;;  %v726_v42 = vpop.trf.xlu1 }
 0x38d   :  { %v711_v37 = vpop.trf.xlu0 }
 0x38e   :  { %1232 = vmatprep.mubr.msk.bf16.mxu0 %vm391_vm1, %v711_v37  ;;  %v727_v44 = vpop.trf.xlu1 }
 0x391   :  { %v712_v38 = vpop.trf.xlu0 }
 0x392   :  { %1233 = vmatmul.mubr.msk.bf16.gmra.mrb[20].mxu0 %vm391_vm1, %v712_v38  ;;  %v728_v46 = vpop.trf.xlu1 }
 0x395   :  { %v713_v40 = vpop.trf.xlu0 }
 0x396   :  { %1236 = vmatprep.mubr.msk.bf16.mxu0 %vm391_vm1, %v713_v40  ;;  %v729_v47 = vpop.trf.xlu1 }
 0x399   :  { %v714_v41 = vpop.trf.xlu0 }
 0x39a   :  { %1237 = vmatmul.mubr.msk.bf16.gmra.mrb[24].mxu0 %vm391_vm1, %v714_v41  ;;  %v730_v48 = vpop.trf.xlu1 }
 0x39d   :  { %v715_v43 = vpop.trf.xlu0 }
 0x39e   :  { %1240 = vmatprep.mubr.msk.bf16.mxu1 %vm391_vm1, %v715_v43  ;;  %v731_v49 = vpop.trf.xlu1 }
 0x3a1   :  { %v716_v45 = vpop.trf.xlu0 }
 0x3a2   :  { %1241 = vmatmul.mubr.msk.bf16.vlgmr.msra.gmra.mrb[32].mxu1 %vm391_vm1, %v716_v45  ;;  %v732_v50 = vpop.trf.xlu1 }
 0x3a3   :  { %1244 = vmatprep.mubr.msk.bf16.mxu1 %vm391_vm1, %v725_v39 }
 0x3aa   :  { %1245 = vmatmul.mubr.msk.bf16.gmra.mrb[36].mxu1 %vm391_vm1, %v726_v42 }
 0x3ab   :  { %1248 = vmatprep.mubr.msk.bf16.mxu1 %vm391_vm1, %v727_v44 }
 0x3b2   :  { %1249 = vmatmul.mubr.msk.bf16.gmra.mrb[40].mxu1 %vm391_vm1, %v728_v46 }
 0x3b3   :  { %1252 = vmatprep.mubr.msk.bf16.mxu1 %vm391_vm1, %v729_v47 }
 0x3ba   :  { %1253 = vmatmul.mubr.msk.bf16.gmra.mrb[44].mxu1 %vm391_vm1, %v730_v48 }
 0x3bb   :  { %1256 = vmatprep.mubr.msk.bf16.mxu1 %vm391_vm1, %v731_v49 }
 0x3c2   :  { %1257 = vmatmul.mubr.msk.bf16.gmra.mrb[48].mxu1 %vm391_vm1, %v732_v50 }
 0x45d   :  { %v1230_v52 = vpop.f32.mrb[16].mxu0 }
 0x45e   :  { %v848_v53 = vadd.f32 %v1230_v52, %v1627_v51  ;;  %v839_v54 = vpop.f32.mrb[17].mxu0 }
 0x45f   :  { %v840_v55 = vadd.f32 %v1627_v51, %v839_v54  ;;  %v1231_v56 = vpop.f32.mrb[18].mxu0 }
 0x460   :  { %v968_v57 = vmax.f32 %v848_v53, 0.0  ;;  %v851_v58 = vadd.f32 %v1231_v56, %v1627_v51  ;;  %v842_v59 = vpop.f32.mrb[19].mxu0 }
 0x461   :  { %v966_v60 = vmax.f32 %v840_v55, 0.0  ;;  %v843_v61 = vadd.f32 %v1627_v51, %v842_v59 }
 0x462   :  { %v1000_v62 = vmul.f32 20.0, %v968_v57  ;;  %v969_v63 = vmax.f32 %v851_v58, 0.0 }
 0x463   :  { %v998_v0 = vmul.f32 20.0, %v966_v60  ;;  %v967_v1 = vmax.f32 %v843_v61, 0.0 }
 0x464   :  { %v1146_v2 = vadd.f32 -10.0, %v1000_v62  ;;  %v1001_v4 = vmul.f32 20.0, %v969_v63 }
 0x465   :  { %v1144_v5 = vadd.f32 -10.0, %v998_v0  ;;  %v999_v6 = vmul.f32 20.0, %v967_v1  ;;  %v1234_v7 = vpop.f32.mrb[20].mxu0 }
 0x466   :  { %1065 = vst.msk [vmem:[%s1798_s9 + $0x10] sm:$0xff] %vm1062_vm2, %v1146_v2  ;;  %v1147_v8 = vadd.f32 -10.0, %v1001_v4  ;;  %v864_v9 = vadd.f32 %v1234_v7, %v1627_v51  ;;  %v855_v10 = vpop.f32.mrb[21].mxu0 }
 0x467   :  { %1063 = vst.msk [vmem:[%s1798_s9] sm:$0xff] %vm1062_vm2, %v1144_v5  ;;  %v1145_v11 = vadd.f32 -10.0, %v999_v6  ;;  %v856_v12 = vadd.f32 %v1627_v51, %v855_v10  ;;  %v1235_v13 = vpop.f32.mrb[22].mxu0 }
 0x468   :  { %1066 = vst.msk [vmem:[%s1798_s9 + $0x18] sm:$0xff] %vm1062_vm2, %v1147_v8  ;;  %v972_v14 = vmax.f32 %v864_v9, 0.0  ;;  %v867_v15 = vadd.f32 %v1235_v13, %v1627_v51  ;;  %v858_v16 = vpop.f32.mrb[23].mxu0 }
 0x469   :  { %1064 = vst.msk [vmem:[%s1798_s9 + $0x8] sm:$0xff] %vm1062_vm2, %v1145_v11  ;;  %v970_v17 = vmax.f32 %v856_v12, 0.0  ;;  %v859_v18 = vadd.f32 %v1627_v51, %v858_v16 }
 0x46a   :  { %v1004_v19 = vmul.f32 20.0, %v972_v14  ;;  %v973_v21 = vmax.f32 %v867_v15, 0.0 }
 0x46b   :  { %v1002_v22 = vmul.f32 20.0, %v970_v17  ;;  %v971_v20 = vmax.f32 %v859_v18, 0.0 }
 0x46c   :  { %v1150_v23 = vadd.f32 -10.0, %v1004_v19  ;;  %v1005_v24 = vmul.f32 20.0, %v973_v21 }
 0x46d   :  { %v1148_v25 = vadd.f32 -10.0, %v1002_v22  ;;  %v1003_v26 = vmul.f32 20.0, %v971_v20  ;;  %v1238_v27 = vpop.f32.mrb[24].mxu0 }
 0x46e   :  { %1069 = vst.msk [vmem:[%s1798_s9 + $0x30] sm:$0xff] %vm1062_vm2, %v1150_v23  ;;  %v1151_v28 = vadd.f32 -10.0, %v1005_v24  ;;  %v880_v29 = vadd.f32 %v1238_v27, %v1627_v51  ;;  %v871_v30 = vpop.f32.mrb[25].mxu0 }
 0x46f   :  { %1067 = vst.msk [vmem:[%s1798_s9 + $0x20] sm:$0xff] %vm1062_vm2, %v1148_v25  ;;  %v1149_v31 = vadd.f32 -10.0, %v1003_v26  ;;  %v872_v32 = vadd.f32 %v1627_v51, %v871_v30  ;;  %v1239_v33 = vpop.f32.mrb[26].mxu0 }
 0x470   :  { %1070 = vst.msk [vmem:[%s1798_s9 + $0x38] sm:$0xff] %vm1062_vm2, %v1151_v28  ;;  %v976_v3 = vmax.f32 %v880_v29, 0.0  ;;  %v883_v34 = vadd.f32 %v1239_v33, %v1627_v51  ;;  %v874_v35 = vpop.f32.mrb[27].mxu0 }
 0x471   :  { %1068 = vst.msk [vmem:[%s1798_s9 + $0x28] sm:$0xff] %vm1062_vm2, %v1149_v31  ;;  %v974_v36 = vmax.f32 %v872_v32, 0.0  ;;  %v875_v37 = vadd.f32 %v1627_v51, %v874_v35 }
 0x472   :  { %v1008_v38 = vmul.f32 20.0, %v976_v3  ;;  %v977_v39 = vmax.f32 %v883_v34, 0.0 }
 0x473   :  { %v1006_v40 = vmul.f32 20.0, %v974_v36  ;;  %v975_v41 = vmax.f32 %v875_v37, 0.0 }
 0x474   :  { %v1154_v42 = vadd.f32 -10.0, %v1008_v38  ;;  %v1009_v43 = vmul.f32 20.0, %v977_v39 }
 0x475   :  { %v1152_v44 = vadd.f32 -10.0, %v1006_v40  ;;  %v1007_v45 = vmul.f32 20.0, %v975_v41  ;;  %v1242_v46 = vpop.f32.mrb[32].mxu1 }
 0x476   :  { %1073 = vst.msk [vmem:[%s1798_s9 + $0x50] sm:$0xff] %vm1062_vm2, %v1154_v42  ;;  %v1155_v47 = vadd.f32 -10.0, %v1009_v43  ;;  %v896_v48 = vadd.f32 %v1242_v46, %v1627_v51  ;;  %v887_v49 = vpop.f32.mrb[33].mxu1 }
 0x477   :  { %1071 = vst.msk [vmem:[%s1798_s9 + $0x40] sm:$0xff] %vm1062_vm2, %v1152_v44  ;;  %v1153_v50 = vadd.f32 -10.0, %v1007_v45  ;;  %v888_v52 = vadd.f32 %v1627_v51, %v887_v49  ;;  %v1243_v53 = vpop.f32.mrb[34].mxu1 }
 0x478   :  { %1074 = vst.msk [vmem:[%s1798_s9 + $0x58] sm:$0xff] %vm1062_vm2, %v1155_v47  ;;  %v980_v54 = vmax.f32 %v896_v48, 0.0  ;;  %v899_v55 = vadd.f32 %v1243_v53, %v1627_v51  ;;  %v890_v56 = vpop.f32.mrb[35].mxu1 }
 0x479   :  { %1072 = vst.msk [vmem:[%s1798_s9 + $0x48] sm:$0xff] %vm1062_vm2, %v1153_v50  ;;  %v978_v57 = vmax.f32 %v888_v52, 0.0  ;;  %v891_v58 = vadd.f32 %v1627_v51, %v890_v56 }
 0x47a   :  { %v1012_v59 = vmul.f32 20.0, %v980_v54  ;;  %v981_v60 = vmax.f32 %v899_v55, 0.0 }
 0x47b   :  { %v1010_v61 = vmul.f32 20.0, %v978_v57  ;;  %v979_v62 = vmax.f32 %v891_v58, 0.0 }
 0x47c   :  { %v1158_v63 = vadd.f32 -10.0, %v1012_v59  ;;  %v1013_v0 = vmul.f32 20.0, %v981_v60 }
 0x47d   :  { %v1156_v1 = vadd.f32 -10.0, %v1010_v61  ;;  %v1011_v2 = vmul.f32 20.0, %v979_v62  ;;  %v1246_v4 = vpop.f32.mrb[36].mxu1 }
 0x47e   :  { %1077 = vst.msk [vmem:[%s1798_s9 + $0x70] sm:$0xff] %vm1062_vm2, %v1158_v63  ;;  %v1159_v5 = vadd.f32 -10.0, %v1013_v0  ;;  %v912_v6 = vadd.f32 %v1246_v4, %v1627_v51  ;;  %v903_v7 = vpop.f32.mrb[37].mxu1 }
 0x47f   :  { %1075 = vst.msk [vmem:[%s1798_s9 + $0x60] sm:$0xff] %vm1062_vm2, %v1156_v1  ;;  %v1157_v8 = vadd.f32 -10.0, %v1011_v2  ;;  %v904_v9 = vadd.f32 %v1627_v51, %v903_v7  ;;  %v1247_v10 = vpop.f32.mrb[38].mxu1 }
 0x480   :  { %1078 = vst.msk [vmem:[%s1798_s9 + $0x78] sm:$0xff] %vm1062_vm2, %v1159_v5  ;;  %v984_v11 = vmax.f32 %v912_v6, 0.0  ;;  %v915_v12 = vadd.f32 %v1247_v10, %v1627_v51  ;;  %v906_v13 = vpop.f32.mrb[39].mxu1 }
 0x481   :  { %1076 = vst.msk [vmem:[%s1798_s9 + $0x68] sm:$0xff] %vm1062_vm2, %v1157_v8  ;;  %v982_v14 = vmax.f32 %v904_v9, 0.0  ;;  %v907_v15 = vadd.f32 %v1627_v51, %v906_v13 }
 0x482   :  { %v1016_v16 = vmul.f32 20.0, %v984_v11  ;;  %v985_v17 = vmax.f32 %v915_v12, 0.0 }
 0x483   :  { %v1014_v18 = vmul.f32 20.0, %v982_v14  ;;  %v983_v19 = vmax.f32 %v907_v15, 0.0 }
 0x484   :  { %v1162_v21 = vadd.f32 -10.0, %v1016_v16  ;;  %v1017_v22 = vmul.f32 20.0, %v985_v17 }
 0x485   :  { %v1160_v20 = vadd.f32 -10.0, %v1014_v18  ;;  %v1015_v23 = vmul.f32 20.0, %v983_v19  ;;  %v1250_v24 = vpop.f32.mrb[40].mxu1 }
 0x486   :  { %1081 = vst.msk [vmem:[%s1798_s9 + $0x90] sm:$0xff] %vm1062_vm2, %v1162_v21  ;;  %v1163_v25 = vadd.f32 -10.0, %v1017_v22  ;;  %v928_v26 = vadd.f32 %v1250_v24, %v1627_v51  ;;  %v919_v27 = vpop.f32.mrb[41].mxu1 }
 0x487   :  { %1079 = vst.msk [vmem:[%s1798_s9 + $0x80] sm:$0xff] %vm1062_vm2, %v1160_v20  ;;  %v1161_v28 = vadd.f32 -10.0, %v1015_v23  ;;  %v920_v29 = vadd.f32 %v1627_v51, %v919_v27  ;;  %v1251_v30 = vpop.f32.mrb[42].mxu1 }
 0x488   :  { %1082 = vst.msk [vmem:[%s1798_s9 + $0x98] sm:$0xff] %vm1062_vm2, %v1163_v25  ;;  %v988_v31 = vmax.f32 %v928_v26, 0.0  ;;  %v931_v32 = vadd.f32 %v1251_v30, %v1627_v51  ;;  %v922_v33 = vpop.f32.mrb[43].mxu1 }
 0x489   :  { %1080 = vst.msk [vmem:[%s1798_s9 + $0x88] sm:$0xff] %vm1062_vm2, %v1161_v28  ;;  %v986_v3 = vmax.f32 %v920_v29, 0.0  ;;  %v923_v34 = vadd.f32 %v1627_v51, %v922_v33 }
 0x48a   :  { %v1020_v35 = vmul.f32 20.0, %v988_v31  ;;  %v989_v36 = vmax.f32 %v931_v32, 0.0 }
 0x48b   :  { %v1018_v37 = vmul.f32 20.0, %v986_v3  ;;  %v987_v38 = vmax.f32 %v923_v34, 0.0 }
 0x48c   :  { %v1166_v39 = vadd.f32 -10.0, %v1020_v35  ;;  %v1021_v40 = vmul.f32 20.0, %v989_v36 }
 0x48d   :  { %v1164_v41 = vadd.f32 -10.0, %v1018_v37  ;;  %v1019_v42 = vmul.f32 20.0, %v987_v38  ;;  %v1254_v43 = vpop.f32.mrb[44].mxu1 }
 0x48e   :  { %1085 = vst.msk [vmem:[%s1798_s9 + $0xb0] sm:$0xff] %vm1062_vm2, %v1166_v39  ;;  %v1167_v44 = vadd.f32 -10.0, %v1021_v40  ;;  %v944_v45 = vadd.f32 %v1254_v43, %v1627_v51  ;;  %v935_v46 = vpop.f32.mrb[45].mxu1 }
 0x48f   :  { %1083 = vst.msk [vmem:[%s1798_s9 + $0xa0] sm:$0xff] %vm1062_vm2, %v1164_v41  ;;  %v1165_v47 = vadd.f32 -10.0, %v1019_v42  ;;  %v936_v48 = vadd.f32 %v1627_v51, %v935_v46  ;;  %v1255_v49 = vpop.f32.mrb[46].mxu1 }
 0x490   :  { %1086 = vst.msk [vmem:[%s1798_s9 + $0xb8] sm:$0xff] %vm1062_vm2, %v1167_v44  ;;  %v992_v50 = vmax.f32 %v944_v45, 0.0  ;;  %v947_v52 = vadd.f32 %v1255_v49, %v1627_v51  ;;  %v938_v53 = vpop.f32.mrb[47].mxu1 }
 0x491   :  { %1084 = vst.msk [vmem:[%s1798_s9 + $0xa8] sm:$0xff] %vm1062_vm2, %v1165_v47  ;;  %v990_v54 = vmax.f32 %v936_v48, 0.0  ;;  %v939_v55 = vadd.f32 %v1627_v51, %v938_v53 }
 0x492   :  { %v1024_v56 = vmul.f32 20.0, %v992_v50  ;;  %v993_v57 = vmax.f32 %v947_v52, 0.0 }
 0x493   :  { %v1022_v58 = vmul.f32 20.0, %v990_v54  ;;  %v991_v59 = vmax.f32 %v939_v55, 0.0 }
 0x494   :  { %v1170_v60 = vadd.f32 -10.0, %v1024_v56  ;;  %v1025_v61 = vmul.f32 20.0, %v993_v57 }
 0x495   :  { %v1168_v62 = vadd.f32 -10.0, %v1022_v58  ;;  %v1023_v63 = vmul.f32 20.0, %v991_v59  ;;  %v1258_v0 = vpop.f32.mrb[48].mxu1 }
 0x496   :  { %1089 = vst.msk [vmem:[%s1798_s9 + $0xd0] sm:$0xff] %vm1062_vm2, %v1170_v60  ;;  %v1171_v1 = vadd.f32 -10.0, %v1025_v61  ;;  %v960_v2 = vadd.f32 %v1258_v0, %v1627_v51  ;;  %v951_v4 = vpop.f32.mrb[49].mxu1 }
 0x497   :  { %1087 = vst.msk [vmem:[%s1798_s9 + $0xc0] sm:$0xff] %vm1062_vm2, %v1168_v62  ;;  %v1169_v5 = vadd.f32 -10.0, %v1023_v63  ;;  %v952_v6 = vadd.f32 %v1627_v51, %v951_v4  ;;  %v1259_v7 = vpop.f32.mrb[50].mxu1 }
 0x498   :  { %1090 = vst.msk [vmem:[%s1798_s9 + $0xd8] sm:$0xff] %vm1062_vm2, %v1171_v1  ;;  %v996_v8 = vmax.f32 %v960_v2, 0.0  ;;  %v963_v9 = vadd.f32 %v1259_v7, %v1627_v51  ;;  %v954_v10 = vpop.f32.mrb[51].mxu1 }
 0x499   :  { %1088 = vst.msk [vmem:[%s1798_s9 + $0xc8] sm:$0xff] %vm1062_vm2, %v1169_v5  ;;  %v994_v11 = vmax.f32 %v952_v6, 0.0  ;;  %v955_v12 = vadd.f32 %v1627_v51, %v954_v10 }
 0x49a   :  { %v1028_v13 = vmul.f32 20.0, %v996_v8  ;;  %v997_v14 = vmax.f32 %v963_v9, 0.0 }
 0x49b   :  { %v1026_v15 = vmul.f32 20.0, %v994_v11  ;;  %v995_v16 = vmax.f32 %v955_v12, 0.0 }
 0x49c   :  { %v1174_v17 = vadd.f32 -10.0, %v1028_v13  ;;  %v1029_v18 = vmul.f32 20.0, %v997_v14 }
 0x49d   :  { %v1172_v19 = vadd.f32 -10.0, %v1026_v15  ;;  %v1027_v21 = vmul.f32 20.0, %v995_v16 }
 0x49e   :  { %1093 = vst.msk [vmem:[%s1798_s9 + $0xf0] sm:$0xff] %vm1062_vm2, %v1174_v17  ;;  %v1175_v22 = vadd.f32 -10.0, %v1029_v18 }
 0x49f   :  { %1091 = vst.msk [vmem:[%s1798_s9 + $0xe0] sm:$0xff] %vm1062_vm2, %v1172_v19  ;;  %v1173_v51 = vadd.f32 -10.0, %v1027_v21 }
 0x4a0   :  { %1094 = vst.msk [vmem:[%s1798_s9 + $0xf8] sm:$0xff] %vm1062_vm2, %v1175_v22 }
 0x4a1   :  { %1092 = vst.msk [vmem:[%s1798_s9 + $0xe8] sm:$0xff] %vm1062_vm2, %v1173_v51 }

</bundles_post_ra>
